<compile_context>
chip_gen: v7x
topology: tpu7x:2x2x1
jax: 0.10.0
libtpu: 0.0.40
codegen_flags: <defaults>
</compile_context>

<pallas_src>
import functools
import math

import jax
import jax.numpy as jnp
from jax.experimental import pallas as pl
from jax.experimental.pallas import tpu as pltpu

_LANE = 128
_MAX_BLOCK_ROWS = 4096          # 4096 x 128 f32 = 2 MiB per input per buffer
_MIN_PALLAS_ELEMS = 8 * _LANE   # below one (8,128) tile, plain XLA is cheaper


def _mse_partial_kernel(d_ref, l_ref, out_ref, acc_ref, *,
                        n_valid, block_rows, blocks_per_core, needs_mask):
    """Accumulate per-lane partial sums of (d - l)^2 for one core's row range."""
    j = pl.program_id(1)

    @pl.when(j == 0)
    def _():
        acc_ref[...] = jnp.zeros_like(acc_ref)

    diff = d_ref[...].astype(jnp.float32) - l_ref[...].astype(jnp.float32)
    sq = diff * diff

    if not needs_mask:
        # Grid tiles the (rows, 128) slab exactly: every block is full and
        # every element is either real data or a zero pad (contributes 0).
        acc_ref[...] += jnp.sum(sq, axis=0, keepdims=True)
    else:
        blk = pl.program_id(0) * blocks_per_core + j      # intended row-block
        base = blk * (block_rows * _LANE)                 # intended flat offset
        is_full = base + block_rows * _LANE <= n_valid

        @pl.when(is_full)
        def _():
            acc_ref[...] += jnp.sum(sq, axis=0, keepdims=True)

        @pl.when(jnp.logical_not(is_full))
        def _():
            # Ragged / out-of-range tail (Pallas-padded OOB rows of the last
            # block, or a fully-duplicated clamped block): zero out flat
            # indices >= n_valid.
            rows_i = jax.lax.broadcasted_iota(jnp.int32, sq.shape, 0)
            cols_i = jax.lax.broadcasted_iota(jnp.int32, sq.shape, 1)
            in_range = (base + rows_i * _LANE + cols_i) < n_valid
            acc_ref[...] += jnp.sum(jnp.where(in_range, sq, 0.0),
                                    axis=0, keepdims=True)

    @pl.when(j == pl.num_programs(1) - 1)
    def _():
        out_ref[...] = acc_ref[...].reshape(out_ref.shape)


@jax.jit
def mse_loss_pallas(data, label):
    """F.mse_loss(data.reshape(-1), label.reshape(-1)) via a Pallas kernel."""
    d = jnp.ravel(jnp.asarray(data))
    l = jnp.ravel(jnp.asarray(label))
    n = d.shape[0]

    if n < _MIN_PALLAS_ELEMS:
        # Too small to amortize a kernel launch; let XLA fuse it.
        diff = d.astype(jnp.float32) - l.astype(jnp.float32)
        return jnp.mean(diff * diff)

    # Lane-dense (rows, 128) view (original dtype, no f32 copy).  Only a ragged
    # element count pays a pad copy; the zero pad contributes 0 to the sum.
    rem = (-n) % _LANE
    if rem:
        d = jnp.pad(d, (0, rem))
        l = jnp.pad(l, (0, rem))
    rows = (n + rem) // _LANE
    d = d.reshape(rows, _LANE)
    l = l.reshape(rows, _LANE)

    block_rows = rows if rows <= _MAX_BLOCK_ROWS else _MAX_BLOCK_ROWS
    n_blocks = pl.cdiv(rows, block_rows)
    n_cores = 2 if n_blocks >= 2 else 1          # megacore split (helps on v7x)
    bpc = pl.cdiv(n_blocks, n_cores)

    # Masking only needed when the last block is partial or when clamping
    # duplicates a block across the core split.  (The zero-padded lane tail
    # never needs masking: (0 - 0)^2 == 0.)
    needs_mask = (rows % block_rows != 0) or (n_blocks % n_cores != 0)

    def in_map(p, j):
        # Clamp so Pallas never sees an out-of-range block index; a duplicated
        # block is fully masked out inside the kernel.
        return (jnp.minimum(p * bpc + j, n_blocks - 1), 0)

    kernel = functools.partial(_mse_partial_kernel, n_valid=n,
                               block_rows=block_rows, blocks_per_core=bpc,
                               needs_mask=needs_mask)

    partials = pl.pallas_call(
        kernel,
        out_shape=jax.ShapeDtypeStruct((n_cores, 1, _LANE), jnp.float32),
        grid_spec=pltpu.PrefetchScalarGridSpec(
            num_scalar_prefetch=0,
            grid=(n_cores, bpc),
            in_specs=[
                pl.BlockSpec((block_rows, _LANE), in_map),
                pl.BlockSpec((block_rows, _LANE), in_map),
            ],
            out_specs=pl.BlockSpec((1, 1, _LANE), lambda p, j: (p, 0, 0)),
            scratch_shapes=[pltpu.VMEM((1, _LANE), jnp.float32)],
        ),
        compiler_params=pltpu.CompilerParams(
            dimension_semantics=("parallel", "arbitrary"),
            vmem_limit_bytes=32 * 1024 * 1024),
    )(d, l)

    return jnp.sum(partials) / jnp.float32(n)


def multi_mse_loss(data, label):
    """Pallas equivalent of MultiMSELoss.forward (weights unused, as in torch)."""
    if not isinstance(data, (list, tuple)):
        return mse_loss_pallas(data, label)
    numels = [math.prod(jnp.shape(x)) for x in data]
    if len(set(numels)) == 1:
        # Equal-size samples: mean of per-sample MSEs == MSE over the fused
        # batch, so run ONE kernel instead of one launch per sample.
        d = jnp.concatenate([jnp.ravel(jnp.asarray(x)) for x in data])
        l = jnp.concatenate([jnp.ravel(jnp.asarray(x)) for x in label])
        return mse_loss_pallas(d, l)
    # Unequal sizes: per-sample loss (Pallas for big samples, XLA for tiny).
    per_sample = [mse_loss_pallas(x, y) for x, y in zip(data, label)]
    return jnp.mean(jnp.stack(per_sample))


if __name__ == "__main__":
    key = jax.random.PRNGKey(0)
    k1, k2, k3, k4, k5, k6 = jax.random.split(key, 6)

    # --- Tensor path: batch=2, channels=4, spatial=16x16 ---
    data = jax.random.normal(k1, (2, 4, 16, 16), dtype=jnp.float32)
    label = jax.random.normal(k2, (2, 4, 16, 16), dtype=jnp.float32)
    loss_tensor = jax.block_until_ready(multi_mse_loss(data, label))
    ref_tensor = jnp.mean((data - label) ** 2)
    assert jnp.allclose(loss_tensor, ref_tensor, rtol=1e-5, atol=1e-6), (
        loss_tensor, ref_tensor)

    # --- Tensor path, bf16 inputs streamed directly (cast happens in-kernel) ---
    loss_bf16 = jax.block_until_ready(
        multi_mse_loss(data.astype(jnp.bfloat16), label.astype(jnp.bfloat16)))
    ref_bf16 = jnp.mean((data.astype(jnp.bfloat16).astype(jnp.float32)
                         - label.astype(jnp.bfloat16).astype(jnp.float32)) ** 2)
    assert jnp.allclose(loss_bf16, ref_bf16, rtol=1e-5, atol=1e-6), (
        loss_bf16, ref_bf16)

    # --- List path, equal-size samples (fused into one kernel call) ---
    data_list = [data[i] for i in range(data.shape[0])]
    label_list = [label[i] for i in range(label.shape[0])]
    loss_list = jax.block_until_ready(multi_mse_loss(data_list, label_list))
    ref_list = jnp.mean(jnp.stack(
        [jnp.mean((x - y) ** 2) for x, y in zip(data_list, label_list)]))
    assert jnp.allclose(loss_list, ref_list, rtol=1e-5, atol=1e-6), (
        loss_list, ref_list)

    # --- List path, unequal-size samples (per-sample path + tiny fallback) ---
    d_small = jax.random.normal(k3, (3, 10, 10), dtype=jnp.float32)
    l_small = jax.random.normal(k4, (3, 10, 10), dtype=jnp.float32)
    loss_mixed = jax.block_until_ready(
        multi_mse_loss([data_list[0], d_small], [label_list[0], l_small]))
    ref_mixed = jnp.mean(jnp.stack([
        jnp.mean((data_list[0] - label_list[0]) ** 2),
        jnp.mean((d_small - l_small) ** 2)]))
    assert jnp.allclose(loss_mixed, ref_mixed, rtol=1e-5, atol=1e-6), (
        loss_mixed, ref_mixed)

    # --- Larger ragged tensor: exercises the lane pad path and full-extent
    #     block (n = 320050 is not a multiple of 128). ---
    big_d = jax.random.normal(k5, (10, 32005), dtype=jnp.float32)
    big_l = jax.random.normal(k6, (10, 32005), dtype=jnp.float32)
    loss_big = jax.block_until_ready(multi_mse_loss(big_d, big_l))
    ref_big = jnp.mean((big_d - big_l) ** 2)
    assert jnp.allclose(loss_big, ref_big, rtol=1e-4, atol=1e-5), (
        loss_big, ref_big)

    # --- Even larger tensor: multi-block grid, partial last block masked
    #     in-kernel, and the 2-way TensorCore split. ---
    big2_d = jax.random.normal(k5, (9000, 130), dtype=jnp.bfloat16)
    big2_l = jax.random.normal(k6, (9000, 130), dtype=jnp.bfloat16)
    loss_big2 = jax.block_until_ready(multi_mse_loss(big2_d, big2_l))
    ref_big2 = jnp.mean((big2_d.astype(jnp.float32)
                         - big2_l.astype(jnp.float32)) ** 2)
    assert jnp.allclose(loss_big2, ref_big2, rtol=1e-4, atol=1e-5), (
        loss_big2, ref_big2)

    print("KERNEL_OK")
</pallas_src>

<mosaic_0001>
module attributes {stable_mosaic.version = 11 : i64} {
  func.func @_mse_partial_kernel(%arg0: i32, %arg1: i32, %arg2: memref<16x128xf32, #tpu.memory_space<vmem>>, %arg3: memref<16x128xf32, #tpu.memory_space<vmem>>, %arg4: memref<1x1x128xf32, #tpu.memory_space<vmem>>, %arg5: memref<1x128xf32, #tpu.memory_space<vmem>>) attributes {dimension_semantics = [#tpu.dimension_semantics<parallel>, #tpu.dimension_semantics<arbitrary>], iteration_bounds = array<i64: 1, 1>, scalar_prefetch = 0 : i64, scratch_operands = 1 : i64, tpu.core_type = #tpu.core_type<tc>, window_params = [{transform_indices = @transform_0, window_bounds = array<i64: 16, 128>}, {transform_indices = @transform_1, window_bounds = array<i64: 16, 128>}, {transform_indices = @transform_2, window_bounds = array<i64: 1, 1, 128>}]} {
    %c0_i32 = arith.constant 0 : i32
    %0 = arith.cmpi eq, %arg1, %c0_i32 : i32
    %1 = arith.extui %0 : i1 to i32
    %c0_i32_0 = arith.constant 0 : i32
    %2 = arith.cmpi ne, %1, %c0_i32_0 : i32
    scf.if %2 {
      %cst_10 = arith.constant 0.000000e+00 : f32
      %15 = vector.broadcast %cst_10 : f32 to vector<1x128xf32>
      %c0_11 = arith.constant 0 : index
      %c0_12 = arith.constant 0 : index
      %16 = vector.load %arg5[%c0_11, %c0_12] : memref<1x128xf32, #tpu.memory_space<vmem>>, vector<1x128xf32>
      tpu.vector_store %arg5[%c0_11, %c0_12], %15 {strides = array<i32>} : memref<1x128xf32, #tpu.memory_space<vmem>>, vector<1x128xf32>,
    } else {
    }
    %c0 = arith.constant 0 : index
    %c0_1 = arith.constant 0 : index
    %3 = vector.load %arg2[%c0, %c0_1] : memref<16x128xf32, #tpu.memory_space<vmem>>, vector<16x128xf32>
    %c0_2 = arith.constant 0 : index
    %c0_3 = arith.constant 0 : index
    %4 = vector.load %arg3[%c0_2, %c0_3] : memref<16x128xf32, #tpu.memory_space<vmem>>, vector<16x128xf32>
    %5 = arith.subf %3, %4 : vector<16x128xf32>
    %6 = arith.mulf %5, %5 : vector<16x128xf32>
    %c0_4 = arith.constant 0 : index
    %c0_5 = arith.constant 0 : index
    %7 = vector.load %arg5[%c0_4, %c0_5] : memref<1x128xf32, #tpu.memory_space<vmem>>, vector<1x128xf32>
    %cst = arith.constant dense<0.000000e+00> : vector<128xf32>
    %8 = vector.multi_reduction <add>, %6, %cst [0] : vector<16x128xf32> to vector<128xf32>
    %9 = vector.shape_cast %8 : vector<128xf32> to vector<1x128xf32>
    %10 = arith.addf %7, %9 : vector<1x128xf32>
    %c0_6 = arith.constant 0 : index
    %c0_7 = arith.constant 0 : index
    %11 = vector.load %arg5[%c0_6, %c0_7] : memref<1x128xf32, #tpu.memory_space<vmem>>, vector<1x128xf32>
    tpu.vector_store %arg5[%c0_6, %c0_7], %10 {strides = array<i32>} : memref<1x128xf32, #tpu.memory_space<vmem>>, vector<1x128xf32>,
    %c0_i32_8 = arith.constant 0 : i32
    %12 = arith.cmpi eq, %arg1, %c0_i32_8 : i32
    %13 = arith.extui %12 : i1 to i32
    %c0_i32_9 = arith.constant 0 : i32
    %14 = arith.cmpi ne, %13, %c0_i32_9 : i32
    scf.if %14 {
      %c0_10 = arith.constant 0 : index
      %c0_11 = arith.constant 0 : index
      %15 = vector.load %arg5[%c0_10, %c0_11] : memref<1x128xf32, #tpu.memory_space<vmem>>, vector<1x128xf32>
      %16 = vector.shape_cast %15 : vector<1x128xf32> to vector<1x1x128xf32>
      %c0_12 = arith.constant 0 : index
      %c0_13 = arith.constant 0 : index
      %c0_14 = arith.constant 0 : index
      %17 = vector.load %arg4[%c0_12, %c0_13, %c0_14] : memref<1x1x128xf32, #tpu.memory_space<vmem>>, vector<1x1x128xf32>
      tpu.vector_store %arg4[%c0_12, %c0_13, %c0_14], %16 {strides = array<i32>} : memref<1x1x128xf32, #tpu.memory_space<vmem>>, vector<1x1x128xf32>,
    } else {
    }
    return
  }
  func.func @transform_0(%arg0: i32, %arg1: i32) -> (i32, i32) {
    %c1_i32 = arith.constant 1 : i32
    %0 = arith.muli %arg0, %c1_i32 : i32
    %1 = arith.addi %0, %arg1 : i32
    %c0_i32 = arith.constant 0 : i32
    %2 = arith.minsi %1, %c0_i32 : i32
    %c0_i32_0 = arith.constant 0 : i32
    %c0_i32_1 = arith.constant 0 : i32
    return %2, %c0_i32_0 : i32, i32
  }
  func.func @transform_1(%arg0: i32, %arg1: i32) -> (i32, i32) {
    %c1_i32 = arith.constant 1 : i32
    %0 = arith.muli %arg0, %c1_i32 : i32
    %1 = arith.addi %0, %arg1 : i32
    %c0_i32 = arith.constant 0 : i32
    %2 = arith.minsi %1, %c0_i32 : i32
    %c0_i32_0 = arith.constant 0 : i32
    %c0_i32_1 = arith.constant 0 : i32
    return %2, %c0_i32_0 : i32, i32
  }
  func.func @transform_2(%arg0: i32, %arg1: i32) -> (i32, i32, i32) {
    %c0_i32 = arith.constant 0 : i32
    %c0_i32_0 = arith.constant 0 : i32
    %c0_i32_1 = arith.constant 0 : i32
    return %arg0, %c0_i32, %c0_i32_0 : i32, i32, i32
  }
}

</mosaic_0001>

<bundles_post_ra>
// kernel: mse_loss_pallas.1
= control target key start
LH: loop header
LB: loop body
LE: loop exit
PB: predicated region body
PF: predicated region fallthrough
CT: control target
= control target key end

     0   :  { %v120_v0 = vmov 0.0   ;;  %s151_s0 = inlined_call_operand.vmem [shape: f32[16,128], index: 0, kind: input, shape index: {}]   ;;  %s152_s1 = inlined_call_operand.vmem [shape: f32[16,128], index: 1, kind: input, shape index: {}]   ;;  %s153_s2 = inlined_call_operand.vmem [shape: f32[1,1,128], index: 2, kind: output, shape index: {}]  }
   0x1   :  { %79 = vst [vmem:[#allocation2] sm:$0x1] %v120_v0  ;;  %v80_v1 = vld [vmem:[%s151_s0] sm:$0xff]  ;;  %v81_v2 = vld [vmem:[%s151_s0 + $0x8] sm:$0xff] }
   0x2   :  { %v82_v3 = vld [vmem:[%s152_s1] sm:$0xff]  ;;  %v83_v4 = vld [vmem:[%s152_s1 + $0x8] sm:$0xff] }
   0x3   :  { %v84_v5 = vsub.f32 %v80_v1, %v82_v3  ;;  %v85_v6 = vsub.f32 %v81_v2, %v83_v4 }
   0x5   :  { %v86_v7 = vmul.f32 %v84_v5, %v84_v5  ;;  %v87_v8 = vmul.f32 %v85_v6, %v85_v6 }
   0x7   :  { %v89_v9 = vadd.f32 %v87_v8, %v86_v7 }
   0x8   :  { %v88_v15 = vld [vmem:[#allocation2] sm:$0x1] }
   0x9   :  { %v90_v10 = vrot.slane %v89_v9, 4 }
   0xb   :  { %v91_v11 = vadd.f32 %v90_v10, %v89_v9 }
   0xd   :  { %v92_v12 = vrot.slane %v91_v11, 2 }
   0xf   :  { %v93_v13 = vadd.f32 %v92_v12, %v91_v11 }
  0x11   :  { %v94_v14 = vrot.slane %v93_v13, 1 }
  0x13   :  { %v95_v16 = vadd.f32 %v94_v14, %v93_v13 }
  0x15   :  { %v96_v17 = vadd.f32 %v95_v16, %v88_v15 }
  0x17   :  { %97 = vst [vmem:[#allocation2] sm:$0x1] %v96_v17 }
  0x1e   :  { %v101_v18 = vld [vmem:[#allocation2] sm:$0x1] }
  0x1f   :  { %102 = vst [vmem:[%s153_s2] sm:$0x1] %v101_v18 }

</bundles_post_ra>
